<compile_context>
chip_gen: v7x
topology: tpu7x:2x2x1
jax: 0.10.0
libtpu: 0.0.40
codegen_flags: <defaults>
</compile_context>

<pallas_src>
import functools
import math

import jax
import jax.numpy as jnp
from jax.experimental import pallas as pl
from jax.experimental.pallas import tpu as pltpu


def _round_up(x, m):
    return ((x + m - 1) // m) * m


def _lora_linear_kernel(x_ref, wt_ref, bias_ref, at_ref, bt_ref, o_ref,
                        acc_ref, xa_ref, *, scaling):
    """Fused (x @ W^T + b) + scaling * (x @ A^T) @ B^T over a (M, N, K) grid.

    Operands are pre-transposed in the wrapper so the kernel does plain
    row-major matmuls (no in-kernel transposes):
      x: (tm, tk)   wt: (tk, tn)   at: (tk, r)   bias: (1, tn)   bt: (r, tn)
    Scratch (live across the K axis): acc (tm, tn) f32, xa (tm, r) f32.
    """
    k = pl.program_id(2)

    @pl.when(k == 0)
    def _init():
        acc_ref[...] = jnp.zeros_like(acc_ref)
        xa_ref[...] = jnp.zeros_like(xa_ref)

    x = x_ref[...]
    # Main matmul partial product and the rank-r LoRA projection share the
    # same K loop; both accumulate in f32, MXU fed with native-dtype tiles.
    acc_ref[...] += jnp.dot(x, wt_ref[...], preferred_element_type=jnp.float32)
    xa_ref[...] += jnp.dot(x, at_ref[...], preferred_element_type=jnp.float32)

    @pl.when(k == pl.num_programs(2) - 1)
    def _finalize():
        # Scaling applied on the tiny (tm, r) intermediate, then one
        # (tm, r) x (r, tn) epilogue matmul + bias add.
        xa = (xa_ref[...] * scaling).astype(bt_ref.dtype)
        lora = jnp.dot(xa, bt_ref[...], preferred_element_type=jnp.float32)
        out = acc_ref[...] + lora + bias_ref[...].astype(jnp.float32)
        o_ref[...] = out.astype(o_ref.dtype)


def lora_linear(x, w, bias, lora_a, lora_b, *, alpha=1.0, r=4,
                tm=256, tn=512, tk=512):
    """LoRALinear forward.

    x: (batch, in_f); w: (out_f, in_f); bias: (out_f,);
    lora_a: (r, in_f); lora_b: (out_f, r).  Returns (batch, out_f) in x.dtype.
    """
    batch, in_f = x.shape
    out_f = w.shape[0]
    rank = lora_a.shape[0]
    scaling = alpha / r

    # Layout plumbing outside the kernel: contract the shared in_f axis
    # directly so the kernel needs no XLU transposes.
    wt = w.T                      # (in_f, out_f)
    at = lora_a.T                 # (in_f, r)
    bt = lora_b.T                 # (r, out_f)
    bias2d = bias.reshape(1, out_f)

    # Clamp tile sizes to the (padded) problem dims; keep lane dims
    # 128-aligned and sublane dims 8-aligned.
    tm = min(tm, _round_up(batch, 8))
    tn = min(tn, _round_up(out_f, 128))
    tk = min(tk, _round_up(in_f, 128))

    mp = _round_up(batch, tm)
    np_ = _round_up(out_f, tn)
    kp = _round_up(in_f, tk)

    def pad2(a, d0, d1):
        return jnp.pad(a, ((0, d0 - a.shape[0]), (0, d1 - a.shape[1])))

    xp = pad2(x, mp, kp)
    wtp = pad2(wt, kp, np_)
    atp = pad2(at, kp, rank)
    btp = pad2(bt, rank, np_)
    biasp = pad2(bias2d, 1, np_)

    grid = (mp // tm, np_ // tn, kp // tk)

    kernel = functools.partial(_lora_linear_kernel, scaling=scaling)

    itemsize = x.dtype.itemsize
    flops = 2 * mp * np_ * kp + 2 * mp * rank * kp + 2 * mp * np_ * rank
    bytes_accessed = (xp.size + wtp.size + atp.size + btp.size + biasp.size
                      + mp * np_) * itemsize

    out = pl.pallas_call(
        kernel,
        out_shape=jax.ShapeDtypeStruct((mp, np_), x.dtype),
        grid_spec=pltpu.PrefetchScalarGridSpec(
            num_scalar_prefetch=0,
            grid=grid,
            in_specs=[
                pl.BlockSpec((tm, tk), lambda i, j, k: (i, k)),    # x
                pl.BlockSpec((tk, tn), lambda i, j, k: (k, j)),    # W^T
                pl.BlockSpec((1, tn), lambda i, j, k: (0, j)),     # bias
                pl.BlockSpec((tk, rank), lambda i, j, k: (k, 0)),  # A^T
                pl.BlockSpec((rank, tn), lambda i, j, k: (0, j)),  # B^T
            ],
            out_specs=pl.BlockSpec((tm, tn), lambda i, j, k: (i, j)),
            scratch_shapes=[
                pltpu.VMEM((tm, tn), jnp.float32),    # acc for x @ W^T
                pltpu.VMEM((tm, rank), jnp.float32),  # acc for x @ A^T
            ],
        ),
        compiler_params=pltpu.CompilerParams(
            dimension_semantics=("parallel", "parallel", "arbitrary")),
        cost_estimate=pl.CostEstimate(
            flops=flops, transcendentals=0, bytes_accessed=bytes_accessed),
    )(xp, wtp, biasp, atp, btp)

    return out[:batch, :out_f]


def _reference(x, w, bias, lora_a, lora_b, *, alpha=1.0, r=4):
    scaling = alpha / r
    orig = x @ w.T + bias
    lora = (x @ lora_a.T) @ lora_b.T * scaling
    return orig + lora


if __name__ == "__main__":
    key = jax.random.PRNGKey(0)
    batch, in_features, out_features, r, alpha = 8, 32, 32, 4, 1.0

    k_x, k_w, k_b, k_a, k_bl = jax.random.split(key, 5)

    x = jax.random.normal(k_x, (batch, in_features), dtype=jnp.float32)

    # Frozen original Linear params (deterministic synthetic init, PyTorch-like bounds).
    w_bound = 1.0 / math.sqrt(in_features)
    w = jax.random.uniform(k_w, (out_features, in_features),
                           minval=-w_bound, maxval=w_bound, dtype=jnp.float32)
    bias = jax.random.uniform(k_b, (out_features,),
                              minval=-w_bound, maxval=w_bound, dtype=jnp.float32)

    # lora_A: kaiming_uniform_(a=sqrt(5)).
    a_bound = math.sqrt(3.0) * math.sqrt(2.0 / (1.0 + 5.0)) / math.sqrt(in_features)
    lora_a = jax.random.uniform(k_a, (r, in_features),
                                minval=-a_bound, maxval=a_bound, dtype=jnp.float32)

    # Case 1: module-faithful init (lora_B == 0 -> LoRA path contributes 0).
    lora_b_zero = jnp.zeros((out_features, r), dtype=jnp.float32)
    out0 = jax.block_until_ready(
        lora_linear(x, w, bias, lora_a, lora_b_zero, alpha=alpha, r=r))
    ref0 = _reference(x, w, bias, lora_a, lora_b_zero, alpha=alpha, r=r)
    assert out0.shape == (batch, out_features)
    assert jnp.allclose(out0, ref0, atol=1e-5, rtol=1e-5), "mismatch (zero B)"

    # Case 2: nonzero lora_B so the rank-r epilogue path is actually exercised.
    lora_b_nz = jax.random.normal(k_bl, (out_features, r), dtype=jnp.float32) * 0.1
    out1 = jax.block_until_ready(
        lora_linear(x, w, bias, lora_a, lora_b_nz, alpha=alpha, r=r))
    ref1 = _reference(x, w, bias, lora_a, lora_b_nz, alpha=alpha, r=r)
    assert jnp.allclose(out1, ref1, atol=1e-5, rtol=1e-5), "mismatch (nonzero B)"

    print("KERNEL_OK")
</pallas_src>

<mosaic_0001>
module attributes {stable_mosaic.version = 11 : i64} {
  func.func @_lora_linear_kernel(%arg0: i32, %arg1: i32, %arg2: i32, %arg3: memref<8x128xf32, #tpu.memory_space<vmem>>, %arg4: memref<128x128xf32, #tpu.memory_space<vmem>>, %arg5: memref<1x128xf32, #tpu.memory_space<vmem>>, %arg6: memref<128x4xf32, #tpu.memory_space<vmem>>, %arg7: memref<4x128xf32, #tpu.memory_space<vmem>>, %arg8: memref<8x128xf32, #tpu.memory_space<vmem>>, %arg9: memref<8x128xf32, #tpu.memory_space<vmem>>, %arg10: memref<8x4xf32, #tpu.memory_space<vmem>>) attributes {dimension_semantics = [#tpu.dimension_semantics<parallel>, #tpu.dimension_semantics<parallel>, #tpu.dimension_semantics<arbitrary>], iteration_bounds = array<i64: 1, 1, 1>, scalar_prefetch = 0 : i64, scratch_operands = 2 : i64, tpu.core_type = #tpu.core_type<tc>, window_params = [{transform_indices = @transform_0, window_bounds = array<i64: 8, 128>}, {transform_indices = @transform_1, window_bounds = array<i64: 128, 128>}, {transform_indices = @transform_2, window_bounds = array<i64: 1, 128>}, {transform_indices = @transform_3, window_bounds = array<i64: 128, 4>}, {transform_indices = @transform_4, window_bounds = array<i64: 4, 128>}, {transform_indices = @transform_5, window_bounds = array<i64: 8, 128>}]} {
    %c0_i32 = arith.constant 0 : i32
    %0 = arith.cmpi eq, %arg2, %c0_i32 : i32
    %1 = arith.extui %0 : i1 to i32
    %c0_i32_0 = arith.constant 0 : i32
    %2 = arith.cmpi ne, %1, %c0_i32_0 : i32
    scf.if %2 {
      %cst_17 = arith.constant 0.000000e+00 : f32
      %17 = vector.broadcast %cst_17 : f32 to vector<8x128xf32>
      %c0_18 = arith.constant 0 : index
      %c0_19 = arith.constant 0 : index
      %18 = vector.load %arg9[%c0_18, %c0_19] : memref<8x128xf32, #tpu.memory_space<vmem>>, vector<8x128xf32>
      tpu.vector_store %arg9[%c0_18, %c0_19], %17 {strides = array<i32>} : memref<8x128xf32, #tpu.memory_space<vmem>>, vector<8x128xf32>,
      %cst_20 = arith.constant 0.000000e+00 : f32
      %19 = vector.broadcast %cst_20 : f32 to vector<8x4xf32>
      %c0_21 = arith.constant 0 : index
      %c0_22 = arith.constant 0 : index
      %20 = vector.load %arg10[%c0_21, %c0_22] : memref<8x4xf32, #tpu.memory_space<vmem>>, vector<8x4xf32>
      tpu.vector_store %arg10[%c0_21, %c0_22], %19 {strides = array<i32>} : memref<8x4xf32, #tpu.memory_space<vmem>>, vector<8x4xf32>,
    } else {
    }
    %c0 = arith.constant 0 : index
    %c0_1 = arith.constant 0 : index
    %3 = vector.load %arg3[%c0, %c0_1] : memref<8x128xf32, #tpu.memory_space<vmem>>, vector<8x128xf32>
    %c0_2 = arith.constant 0 : index
    %c0_3 = arith.constant 0 : index
    %4 = vector.load %arg9[%c0_2, %c0_3] : memref<8x128xf32, #tpu.memory_space<vmem>>, vector<8x128xf32>
    %c0_4 = arith.constant 0 : index
    %c0_5 = arith.constant 0 : index
    %5 = vector.load %arg4[%c0_4, %c0_5] : memref<128x128xf32, #tpu.memory_space<vmem>>, vector<128x128xf32>
    %cst = arith.constant dense<0.000000e+00> : vector<8x128xf32>
    %6 = tpu.matmul %3, %5, %cst {dimension_numbers = #tpu.dot_dimension_numbers<[1], [0], [0], [1], [0, 0, 1, 1], [], []>} : vector<8x128xf32>, vector<128x128xf32>, vector<8x128xf32> -> vector<8x128xf32>
    %7 = arith.addf %4, %6 : vector<8x128xf32>
    %c0_6 = arith.constant 0 : index
    %c0_7 = arith.constant 0 : index
    %8 = vector.load %arg9[%c0_6, %c0_7] : memref<8x128xf32, #tpu.memory_space<vmem>>, vector<8x128xf32>
    tpu.vector_store %arg9[%c0_6, %c0_7], %7 {strides = array<i32>} : memref<8x128xf32, #tpu.memory_space<vmem>>, vector<8x128xf32>,
    %c0_8 = arith.constant 0 : index
    %c0_9 = arith.constant 0 : index
    %9 = vector.load %arg10[%c0_8, %c0_9] : memref<8x4xf32, #tpu.memory_space<vmem>>, vector<8x4xf32>
    %c0_10 = arith.constant 0 : index
    %c0_11 = arith.constant 0 : index
    %10 = vector.load %arg6[%c0_10, %c0_11] : memref<128x4xf32, #tpu.memory_space<vmem>>, vector<128x4xf32>
    %cst_12 = arith.constant dense<0.000000e+00> : vector<8x4xf32>
    %11 = tpu.matmul %3, %10, %cst_12 {dimension_numbers = #tpu.dot_dimension_numbers<[1], [0], [0], [1], [0, 0, 1, 1], [], []>} : vector<8x128xf32>, vector<128x4xf32>, vector<8x4xf32> -> vector<8x4xf32>
    %12 = arith.addf %9, %11 : vector<8x4xf32>
    %c0_13 = arith.constant 0 : index
    %c0_14 = arith.constant 0 : index
    %13 = vector.load %arg10[%c0_13, %c0_14] : memref<8x4xf32, #tpu.memory_space<vmem>>, vector<8x4xf32>
    tpu.vector_store %arg10[%c0_13, %c0_14], %12 {strides = array<i32>} : memref<8x4xf32, #tpu.memory_space<vmem>>, vector<8x4xf32>,
    %c0_i32_15 = arith.constant 0 : i32
    %14 = arith.cmpi eq, %arg2, %c0_i32_15 : i32
    %15 = arith.extui %14 : i1 to i32
    %c0_i32_16 = arith.constant 0 : i32
    %16 = arith.cmpi ne, %15, %c0_i32_16 : i32
    scf.if %16 {
      %c0_17 = arith.constant 0 : index
      %c0_18 = arith.constant 0 : index
      %17 = vector.load %arg10[%c0_17, %c0_18] : memref<8x4xf32, #tpu.memory_space<vmem>>, vector<8x4xf32>
      %cst_19 = arith.constant 2.500000e-01 : f32
      %18 = vector.broadcast %cst_19 : f32 to vector<8x4xf32>
      %19 = arith.mulf %17, %18 : vector<8x4xf32>
      %c0_20 = arith.constant 0 : index
      %c0_21 = arith.constant 0 : index
      %20 = vector.load %arg7[%c0_20, %c0_21] : memref<4x128xf32, #tpu.memory_space<vmem>>, vector<4x128xf32>
      %cst_22 = arith.constant dense<0.000000e+00> : vector<8x128xf32>
      %21 = tpu.matmul %19, %20, %cst_22 {dimension_numbers = #tpu.dot_dimension_numbers<[1], [0], [0], [1], [0, 0, 1, 1], [], []>} : vector<8x4xf32>, vector<4x128xf32>, vector<8x128xf32> -> vector<8x128xf32>
      %c0_23 = arith.constant 0 : index
      %c0_24 = arith.constant 0 : index
      %22 = vector.load %arg9[%c0_23, %c0_24] : memref<8x128xf32, #tpu.memory_space<vmem>>, vector<8x128xf32>
      %23 = arith.addf %22, %21 : vector<8x128xf32>
      %c0_25 = arith.constant 0 : index
      %c0_26 = arith.constant 0 : index
      %24 = vector.load %arg5[%c0_25, %c0_26] : memref<1x128xf32, #tpu.memory_space<vmem>>, vector<1x128xf32>
      %25 = vector.broadcast %24 : vector<1x128xf32> to vector<8x128xf32>
      %26 = arith.addf %23, %25 : vector<8x128xf32>
      %c0_27 = arith.constant 0 : index
      %c0_28 = arith.constant 0 : index
      %27 = vector.load %arg8[%c0_27, %c0_28] : memref<8x128xf32, #tpu.memory_space<vmem>>, vector<8x128xf32>
      tpu.vector_store %arg8[%c0_27, %c0_28], %26 {strides = array<i32>} : memref<8x128xf32, #tpu.memory_space<vmem>>, vector<8x128xf32>,
    } else {
    }
    return
  }
  func.func @transform_0(%arg0: i32, %arg1: i32, %arg2: i32) -> (i32, i32) {
    %c0_i32 = arith.constant 0 : i32
    return %arg0, %arg2 : i32, i32
  }
  func.func @transform_1(%arg0: i32, %arg1: i32, %arg2: i32) -> (i32, i32) {
    %c0_i32 = arith.constant 0 : i32
    return %arg2, %arg1 : i32, i32
  }
  func.func @transform_2(%arg0: i32, %arg1: i32, %arg2: i32) -> (i32, i32) {
    %c0_i32 = arith.constant 0 : i32
    %c0_i32_0 = arith.constant 0 : i32
    return %c0_i32, %arg1 : i32, i32
  }
  func.func @transform_3(%arg0: i32, %arg1: i32, %arg2: i32) -> (i32, i32) {
    %c0_i32 = arith.constant 0 : i32
    %c0_i32_0 = arith.constant 0 : i32
    return %arg2, %c0_i32 : i32, i32
  }
  func.func @transform_4(%arg0: i32, %arg1: i32, %arg2: i32) -> (i32, i32) {
    %c0_i32 = arith.constant 0 : i32
    %c0_i32_0 = arith.constant 0 : i32
    return %c0_i32, %arg1 : i32, i32
  }
  func.func @transform_5(%arg0: i32, %arg1: i32, %arg2: i32) -> (i32, i32) {
    %c0_i32 = arith.constant 0 : i32
    return %arg0, %arg1 : i32, i32
  }
}

</mosaic_0001>

<bundles_post_ra>
// kernel: tpu_custom_call.1
= control target key start
LH: loop header
LB: loop body
LE: loop exit
PB: predicated region body
PF: predicated region fallthrough
CT: control target
= control target key end

     0   :  { %10 = vsyncpa [#allocation5], 0  ;;  %s732_s0 = inlined_call_operand.hbm [shape: f32[8,128], index: 0, kind: input, shape index: {}]   ;;  %s733_s1 = inlined_call_operand.vmem [shape: f32[128,128], index: 1, kind: input, shape index: {}]   ;;  %s734_s2 = inlined_call_operand.vmem [shape: f32[1,128], index: 2, kind: input, shape index: {}]   ;;  %s735_s3 = inlined_call_operand.vmem [shape: f32[128,4], index: 3, kind: input, shape index: {}]   ;;  %s736_s4 = inlined_call_operand.vmem [shape: f32[4,128], index: 4, kind: input, shape index: {}]   ;;  %s737_s5 = inlined_call_operand.hbm [shape: f32[8,128], index: 5, kind: output, shape index: {}]  }
   0x1   :  { %11 = vsyncpa [#allocation6], 0  ;;  %s544_s18 = smov [#allocation4]   ;;  %s496_s22 = scalar_lea.hbm %s732_s0, 128 }
   0x2   :  { %s18_s19 = sshll.u32 %s544_s18, 4  ;;  %p497_p0 = scmp.ne.s32.totalorder %s732_s0, %s496_s22  ;;  %s19_s19 = int_to_ptr.vmem [resolvable:$true] %s18_s19 }
   0x3   :  { %p500_p1 = scmp.lt.u32.totalorder %s496_s22, %s732_s0 }
   0x5   :  { %p502_p2 = pnand %p500_p1, %p497_p0 }
   0x7   :  { %505 = shalt.err (!%p502_p2)
}
   0x8   :  { %s506_s27 = scalar_lea.vmem %s19_s19, 128  ;;  %p511_p4 = scmp.lt.s32.totalorder %s19_s19, %s19_s19 }
   0x9   :  { %p507_p3 = scmp.ne.s32.totalorder %s19_s19, %s506_s27  ;;  %p512_p5 = scmp.lt.s32.totalorder %s506_s27, %s506_s27 }
   0xb   :  { %p513_p6 = por %p512_p5, %p511_p4 }
   0xd   :  { %p514_p7 = pnand %p513_p6, %p507_p3 }
   0xf   :  { %517 = shalt.err (!%p514_p7)
}
  0x10   :  { %21 = dma.hbm_to_vmem [thread:$0]  %s732_s0, 128, %s19_s19, [#allocation5]  }
  0x11   :  { %540 = dma.done.wait [#allocation5], 128  }
  0x12   :  { %541 = vsyncadd [#allocation5], 4294967168  ;;  %vm38_vm0 = vcmask 31744   ;;  %v545_v0 = vmov 0.0|0.0   ;;  %vm546_vm1 = vmmov 0   ;;  %v547_v1 = vmov 0.0  }
  0x13   :  { %467 = vmatprep.subr.bf16.mxu1 %v545_v0  ;;  %435 = vmatprep.mubr.msk.f32.mxu1 %vm546_vm1, %v547_v1  ;;  %39 = vst.msk [vmem:[#allocation3] sm:$0xff] %vm38_vm0, %v547_v1  ;;  %v131_v2 = vld [vmem:[%s735_s3] sm:$0xff]  ;;  %v132_v3 = vld [vmem:[%s735_s3 + $0x8] sm:$0xff]  ;;  %v133_v4 = vld [vmem:[%s735_s3 + $0x10] sm:$0xff]  ;;  %vm229_vm2 = vcmask 1043456   ;;  %s548_s17 = smov [#allocation7]  }
  0x14   :  { %443 = vmatprep.subr.bf16.mxu0 %v545_v0  ;;  %400 = vmatprep.mubr.msk.f32.mxu0 %vm546_vm1, %v547_v1  ;;  %v468_v5 = vpack.c.bf16 %v132_v3, %v131_v2  ;;  %v134_v6 = vld [vmem:[%s735_s3 + $0x18] sm:$0xff]  ;;  %v135_v8 = vld [vmem:[%s735_s3 + $0x20] sm:$0xff]  ;;  %v136_v9 = vld [vmem:[%s735_s3 + $0x28] sm:$0xff]  ;;  %s320_s18 = sshll.u32 %s548_s17, 4  ;;  %s321_s18 = int_to_ptr.vmem [resolvable:$true] %s320_s18 }
  0x15   :  { %v471_v7 = vpack.c.bf16 %v134_v6, %v133_v4  ;;  %v42_v10 = vld [vmem:[%s733_s1] sm:$0xff]  ;;  %v43_v11 = vld [vmem:[%s733_s1 + $0x8] sm:$0xff]  ;;  %v44_v12 = vld [vmem:[%s733_s1 + $0x10] sm:$0xff]  ;;  %v474_v14 = vpack.c.bf16 %v136_v9, %v135_v8  ;;  %s518_s19 = scalar_lea.vmem %s321_s18, 128  ;;  %p523_p9 = scmp.lt.s32.totalorder %s321_s18, %s321_s18 }
  0x16   :  { %469 = vmatpush3.bf16.msra.mxu1 %v468_v5  ;;  %v45_v13 = vld [vmem:[%s733_s1 + $0x18] sm:$0xff]  ;;  %v444_v15 = vpack.c.bf16 %v43_v11, %v42_v10  ;;  %v137_v16 = vld [vmem:[%s735_s3 + $0x30] sm:$0xff]  ;;  %v46_v19 = vld [vmem:[%s733_s1 + $0x20] sm:$0xff]  ;;  %p519_p8 = scmp.ne.s32.totalorder %s321_s18, %s518_s19  ;;  %p524_p10 = scmp.lt.s32.totalorder %s518_s19, %s518_s19 }
  0x17   :  { %470 = vmatprep.subr.bf16.mxu1 %v545_v0  ;;  %v138_v17 = vld [vmem:[%s735_s3 + $0x38] sm:$0xff]  ;;  %v447_v18 = vpack.c.bf16 %v45_v13, %v44_v12  ;;  %v47_v20 = vld [vmem:[%s733_s1 + $0x28] sm:$0xff]  ;;  %v139_v22 = vld [vmem:[%s735_s3 + $0x40] sm:$0xff] }
  0x18   :  { %445 = vmatpush3.bf16.msra.mxu0 %v444_v15  ;;  %v477_v21 = vpack.c.bf16 %v138_v17, %v137_v16  ;;  %v140_v23 = vld [vmem:[%s735_s3 + $0x48] sm:$0xff]  ;;  %v450_v24 = vpack.c.bf16 %v47_v20, %v46_v19  ;;  %v48_v25 = vld [vmem:[%s733_s1 + $0x30] sm:$0xff]  ;;  %v49_v26 = vld [vmem:[%s733_s1 + $0x38] sm:$0xff]  ;;  %p525_p11 = por %p524_p10, %p523_p9 }
  0x19   :  { %446 = vmatprep.subr.bf16.mxu0 %v545_v0  ;;  %v480_v27 = vpack.c.bf16 %v140_v23, %v139_v22  ;;  %v141_v28 = vld [vmem:[%s735_s3 + $0x50] sm:$0xff]  ;;  %v142_v29 = vld [vmem:[%s735_s3 + $0x58] sm:$0xff]  ;;  %v453_v30 = vpack.c.bf16 %v49_v26, %v48_v25  ;;  %v50_v31 = vld [vmem:[%s733_s1 + $0x40] sm:$0xff] }
  0x1a   :  { %472 = vmatpush3.bf16.msra.mxu1 %v471_v7  ;;  %v51_v32 = vld [vmem:[%s733_s1 + $0x48] sm:$0xff]  ;;  %v483_v33 = vpack.c.bf16 %v142_v29, %v141_v28  ;;  %v143_v34 = vld [vmem:[%s735_s3 + $0x60] sm:$0xff]  ;;  %v52_v37 = vld [vmem:[%s733_s1 + $0x50] sm:$0xff]  ;;  %p526_p12 = pnand %p525_p11, %p519_p8 }
  0x1b   :  { %473 = vmatprep.subr.bf16.mxu1 %v545_v0  ;;  %v144_v35 = vld [vmem:[%s735_s3 + $0x68] sm:$0xff]  ;;  %v456_v36 = vpack.c.bf16 %v51_v32, %v50_v31  ;;  %v53_v38 = vld [vmem:[%s733_s1 + $0x58] sm:$0xff]  ;;  %v145_v40 = vld [vmem:[%s735_s3 + $0x70] sm:$0xff] }
  0x1c   :  { %448 = vmatpush3.bf16.msra.mxu0 %v447_v18  ;;  %v486_v39 = vpack.c.bf16 %v144_v35, %v143_v34  ;;  %v146_v41 = vld [vmem:[%s735_s3 + $0x78] sm:$0xff]  ;;  %v459_v42 = vpack.c.bf16 %v53_v38, %v52_v37  ;;  %v40_v44 = vld [vmem:[#allocation4] sm:$0xff]  ;;  %v54_v45 = vld [vmem:[%s733_s1 + $0x60] sm:$0xff] }
  0x1d   :  { %449 = vmatprep.subr.bf16.mxu0 %v545_v0  ;;  %v489_v43 = vpack.c.bf16 %v146_v41, %v145_v40  ;;  %v55_v46 = vld [vmem:[%s733_s1 + $0x68] sm:$0xff]  ;;  %v56_v48 = vld [vmem:[%s733_s1 + $0x70] sm:$0xff]  ;;  %v57_v49 = vld [vmem:[%s733_s1 + $0x78] sm:$0xff] }
  0x1e   :  { %475 = vmatpush3.bf16.msra.mxu1 %v474_v14  ;;  %v462_v47 = vpack.c.bf16 %v55_v46, %v54_v45  ;;  %v465_v50 = vpack.c.bf16 %v57_v49, %v56_v48  ;;  %v225_v51 = vld [vmem:[%s736_s4] sm:$0xf] }
  0x1f   :  { %476 = vmatprep.subr.bf16.mxu1 %v545_v0  ;;  %v130_v52 = vld [vmem:[#allocation3] sm:$0xff] }
  0x20   :  { %451 = vmatpush3.bf16.msra.mxu0 %v450_v24  ;;  %v331_v61 = vld [vmem:[%s734_s2] ss:$0 sm:$0xff] }
  0x21   :  { %452 = vmatprep.subr.bf16.mxu0 %v545_v0 }
  0x22   :  { %478 = vmatpush3.bf16.msra.mxu1 %v477_v21 }
  0x23   :  { %479 = vmatprep.subr.bf16.mxu1 %v545_v0 }
  0x24   :  { %454 = vmatpush3.bf16.msra.mxu0 %v453_v30 }
  0x25   :  { %455 = vmatprep.subr.bf16.mxu0 %v545_v0 }
  0x26   :  { %481 = vmatpush3.bf16.msra.mxu1 %v480_v27 }
  0x27   :  { %482 = vmatprep.subr.bf16.mxu1 %v545_v0 }
  0x28   :  { %457 = vmatpush3.bf16.msra.mxu0 %v456_v36 }
  0x29   :  { %458 = vmatprep.subr.bf16.mxu0 %v545_v0 }
  0x2a   :  { %484 = vmatpush3.bf16.msra.mxu1 %v483_v33 }
  0x2b   :  { %485 = vmatprep.subr.bf16.mxu1 %v545_v0 }
  0x2c   :  { %460 = vmatpush3.bf16.msra.mxu0 %v459_v42 }
  0x2d   :  { %461 = vmatprep.subr.bf16.mxu0 %v545_v0 }
  0x2e   :  { %487 = vmatpush3.bf16.msra.mxu1 %v486_v39 }
  0x2f   :  { %488 = vmatprep.subr.bf16.mxu1 %v545_v0 }
  0x30   :  { %463 = vmatpush3.bf16.msra.mxu0 %v462_v47 }
  0x31   :  { %464 = vmatprep.subr.bf16.mxu0 %v545_v0 }
  0x32   :  { %490 = vmatpush3.bf16.msra.mxu1 %v489_v43 }
  0x34   :  { %466 = vmatpush3.bf16.msra.mxu0 %v465_v50 }
  0x35   :  { %436 = vmatmul.mubr.f32.vlgmr.msra.gmra.mrb[0].mxu1 %v40_v44  ;;  %438 = vmatprep.subr.mxu0 %v547_v1 }
  0x37   :  { %401 = vmatmul.mubr.f32.vlgmr.msra.gmra.mrb[0].mxu0 %v40_v44 }
  0x38   :  { %439 = vmatpush3.msk.msra.mxu0 %vm229_vm2, %v225_v51  ;;  %440 = vmatprep.mubr.msk.f32.mxu0 %vm546_vm1, %v547_v1 }
 0x108   :  { %v213_v53 = vpop.f32.mrb[0].mxu1 }
 0x109   :  { %v217_v54 = vadd.f32 %v213_v53, %v130_v52  ;;  %v437_v55 = vpop.f32.mrb[1].mxu1 }
 0x10a   :  { %v124_v58 = vpop.f32.mrb[0].mxu0 }
 0x10b   :  { %219 = vst.msk [vmem:[#allocation3] sm:$0xff] %vm38_vm0, %v217_v54  ;;  %v402_v59 = vpop.f32.mrb[1].mxu0 }
 0x112   :  { %v223_v56 = vld [vmem:[#allocation3] sm:$0xff] }
 0x113   :  { %v224_v57 = vmul.f32 0.25, %v223_v56 }
 0x115   :  { %441 = vmatmul.mubr.msk.f32.vlgmr.msra.gmra.mrb[2].mxu0 %vm38_vm0, %v224_v57 }
 0x1e8   :  { %v299_v60 = vpop.f32.mrb[2].mxu0 }
 0x1e9   :  { %v304_v62 = vadd.f32 %v299_v60, %v124_v58  ;;  %v442_v63 = vpop.f32.mrb[3].mxu0 }
 0x1eb   :  { %v312_v0 = vadd.f32 %v331_v61, %v304_v62 }
 0x1ed   :  { %313 = vst [vmem:[#allocation7] sm:$0xff] %v312_v0 }
 0x1ee   :  { %529 = shalt.err (!%p526_p12)
}
 0x1ef   :  { %s530_s22 = scalar_lea.hbm %s737_s5, 128 }
 0x1f0   :  { %p531_p13 = scmp.ne.s32.totalorder %s737_s5, %s530_s22  ;;  %p534_p0 = scmp.lt.u32.totalorder %s530_s22, %s737_s5 }
 0x1f2   :  { %p536_p1 = pnand %p534_p0, %p531_p13 }
 0x1f4   :  { %539 = shalt.err (!%p536_p1)
}
 0x1f5   :  { %323 = dma.vmem_to_hbm [thread:$0]  %s321_s18, 128, %s737_s5, [#allocation6]  }
 0x1f6   :  { %542 = dma.done.wait [#allocation6], 128  }
 0x1f7   :  { %543 = vsyncadd [#allocation6], 4294967168 }
 0x1f8   :  { %327 = vsyncpa [#allocation5], 1 }
 0x1f9   :  { %328 = vsyncpa [#allocation6], 1 }

</bundles_post_ra>
